<compile_context>
chip_gen: v7x
topology: tpu7x:2x2x1
jax: 0.10.0
libtpu: 0.0.40
codegen_flags: <defaults>
</compile_context>

<pallas_src>
import jax
import jax.numpy as jnp
from jax.experimental import pallas as pl
from jax.experimental.pallas import tpu as pltpu


LEAKY_SLOPE = 0.01  # torch.nn.LeakyReLU default negative_slope
LANES = 128


def _leaky_relu(x):
    # max(x, 0.01*x): 2 VPU ops (mul+max) instead of cmp+select.
    return jnp.maximum(x, LEAKY_SLOPE * x)


# ----------------------------------------------------------------------------
# Parameter construction (deterministic, mirrors VAE_ForwardModel.__init__)
# ----------------------------------------------------------------------------
def _xavier_uniform(key, fan_in, fan_out):
    bound = (6.0 / (fan_in + fan_out)) ** 0.5
    # stored as (in, out) — pre-transposed relative to torch's (out, in)
    return jax.random.uniform(key, (fan_in, fan_out), jnp.float32,
                              minval=-bound, maxval=bound)


def _default_bias(key, fan_in, fan_out):
    bound = 1.0 / (fan_in ** 0.5)
    return jax.random.uniform(key, (1, fan_out), jnp.float32,
                              minval=-bound, maxval=bound)


def init_vae_params(key, state_dim, latent_dim, action_dim, step=4):
    depth = (state_dim - latent_dim) // step - 1
    dims = [(state_dim - i * step, state_dim - (i + 1) * step) for i in range(depth)]
    bottleneck = dims[-1][1]

    enc_dims = list(dims)
    dec_dims = [(latent_dim, bottleneck)] + [
        (dims[depth - i - 1][1], dims[depth - i - 1][0]) for i in range(depth)
    ]

    params = {"enc": [], "dec": []}
    for (fi, fo) in enc_dims:
        key, kw, kb = jax.random.split(key, 3)
        params["enc"].append((_xavier_uniform(kw, fi, fo), _default_bias(kb, fi, fo)))

    key, kw, kb = jax.random.split(key, 3)
    params["zm_w"] = _xavier_uniform(kw, bottleneck, latent_dim)
    params["zm_b"] = _default_bias(kb, bottleneck, latent_dim)

    key, kw, kb = jax.random.split(key, 3)
    params["zv_w"] = _xavier_uniform(kw, bottleneck, latent_dim)
    params["zv_b"] = _default_bias(kb, bottleneck, latent_dim)

    key, kw, kb = jax.random.split(key, 3)
    nz_w = _xavier_uniform(kw, latent_dim + action_dim, latent_dim)
    params["nz_wz"] = nz_w[:latent_dim]
    params["nz_wa"] = nz_w[latent_dim:]
    params["nz_b"] = _default_bias(kb, latent_dim + action_dim, latent_dim)

    for (fi, fo) in dec_dims:
        key, kw, kb = jax.random.split(key, 3)
        params["dec"].append((_xavier_uniform(kw, fi, fo), _default_bias(kb, fi, fo)))

    return params


# ----------------------------------------------------------------------------
# Host-side packing: every layer -> one full (128,128) bf16 stripe + one full
# 128-lane f32 bias row.  Lane layout (fixed for the whole kernel):
#   input slab : [ eps(0..L-1) | unused(L..2L-1) | action(2L..2L+A-1)
#                | state(2L+A..2L+A+S-1) | zeros ]
#   head out   : [ mu(0..L-1) | logvar(L..2L-1) | zeros ]
#   output slab: [ mu(0..L-1) | logvar(L..2L-1) | recon(2L..2L+S-1) ]
# ----------------------------------------------------------------------------
def pack_params(params):
    latent = params["zm_w"].shape[1]
    action_dim = params["nz_wa"].shape[0]
    state_dim = params["dec"][-1][0].shape[1]

    eps_off = 0
    act_off = 2 * latent
    st_off = 2 * latent + action_dim
    assert 2 * latent <= LANES, "fused head exceeds 128 lanes"
    assert st_off + state_dim <= LANES, "packed input slab exceeds 128 lanes"
    assert 2 * latent + state_dim <= LANES, "output slab exceeds 128 lanes"

    stripes, biases = [], []

    def add_stripe(w, b, row_off=0, col_off=0):
        fi, fo = w.shape
        assert row_off + fi <= LANES, "layer fan_in exceeds one 128-row stripe"
        assert col_off + fo <= LANES, "layer fan_out exceeds one 128-lane stripe"
        ws = jnp.zeros((LANES, LANES), jnp.float32)
        ws = ws.at[row_off:row_off + fi, col_off:col_off + fo].set(w)
        bs = jnp.zeros((LANES,), jnp.float32)
        bs = bs.at[col_off:col_off + fo].set(b.reshape(-1))
        stripes.append(ws)
        biases.append(bs)

    # encoder: first layer's weight rows align with the state lanes of the slab
    for i, (w, b) in enumerate(params["enc"]):
        add_stripe(w, b, row_off=st_off if i == 0 else 0)

    # fused mu | logvar head (single matmul)
    head_w = jnp.concatenate([params["zm_w"], params["zv_w"]], axis=1)
    head_b = jnp.concatenate([params["zm_b"], params["zv_b"]], axis=1)
    add_stripe(head_w, head_b)

    # fused next_z: z-weights on the z lanes, action-weights on the action lanes
    nz_w = jnp.zeros((LANES, LANES), jnp.float32)
    nz_w = nz_w.at[eps_off:eps_off + latent, :latent].set(params["nz_wz"])
    nz_w = nz_w.at[act_off:act_off + action_dim, :latent].set(params["nz_wa"])
    nz_b = jnp.zeros((LANES,), jnp.float32)
    nz_b = nz_b.at[:latent].set(params["nz_b"].reshape(-1))
    stripes.append(nz_w)
    biases.append(nz_b)

    # decoder: last layer's output columns sit at the recon lanes of the output
    n_dec = len(params["dec"])
    for i, (w, b) in enumerate(params["dec"]):
        add_stripe(w, b, col_off=2 * latent if i == n_dec - 1 else 0)

    n_stripes = len(stripes)
    w_packed = jnp.stack(stripes).astype(jnp.bfloat16)        # (NS, 128, 128)
    b_rows = ((n_stripes + 7) // 8) * 8
    b_packed = jnp.zeros((b_rows, LANES), jnp.float32)
    b_packed = b_packed.at[:n_stripes].set(jnp.stack(biases))  # (ceil8(NS), 128)

    layout = dict(
        n_enc=len(params["enc"]), n_dec=n_dec,
        head=len(params["enc"]), nz=len(params["enc"]) + 1,
        dec0=len(params["enc"]) + 2,
        latent=latent, action=action_dim, state=state_dim,
        eps_off=eps_off, act_off=act_off, st_off=st_off,
        out_width=2 * latent + state_dim,
    )
    return w_packed, b_packed, layout


# ----------------------------------------------------------------------------
# Fused Pallas kernel
# ----------------------------------------------------------------------------
def make_vae_forward_kernel(layout):
    n_enc, n_dec = layout["n_enc"], layout["n_dec"]
    head_i, nz_i, dec0 = layout["head"], layout["nz"], layout["dec0"]
    latent, state_dim = layout["latent"], layout["state"]

    def kernel(in_ref, w_ref, b_ref, out_ref):
        def dense(x, idx):
            # full-stripe bf16 matmul (K=N=128), f32 accumulate, f32 bias row
            y = jnp.dot(x.astype(jnp.bfloat16), w_ref[idx],
                        preferred_element_type=jnp.float32)
            return y + b_ref[idx:idx + 1, :]

        # ---- encoder MLP (padding lanes stay exactly zero through LeakyReLU)
        x = in_ref[...]                                # (tb, 128)
        for i in range(n_enc):
            x = _leaky_relu(dense(x, i))

        # ---- fused mu|logvar head; write them out immediately (frees vregs)
        head_out = dense(x, head_i)                    # mu | logvar | zeros
        out_ref[:, :2 * latent] = head_out[:, :2 * latent]

        # ---- reparameterize + build [z | action] slab in-lane:
        #   std lanes < latent, 1 elsewhere, so action/state lanes pass through
        tb = head_out.shape[0]
        lv = jnp.concatenate(
            [head_out[:, latent:2 * latent],
             jnp.zeros((tb, LANES - latent), jnp.float32)], axis=-1)
        z_act = head_out + in_ref[...] * jnp.exp(0.5 * lv)

        # ---- next_z = Linear(concat([z, action])) as ONE stripe matmul
        h = dense(z_act, nz_i)

        # ---- decoder MLP (LeakyReLU after every Linear except the last)
        for i in range(n_dec - 1):
            h = _leaky_relu(dense(h, dec0 + i))
        h = dense(h, dec0 + n_dec - 1)                 # recon at lanes [2L, 2L+S)
        out_ref[:, 2 * latent:] = h[:, 2 * latent:2 * latent + state_dim]

    return kernel


# ----------------------------------------------------------------------------
# Pallas wrapper
# ----------------------------------------------------------------------------
def _pick_tile_b(batch):
    # >= 2 grid steps for batch >= 32 (v7x dual-TC sharding + DMA/compute
    # overlap); cap at 256 so (tile,128) f32 intermediates stay in 64 vregs.
    if batch < 32:
        return batch
    for cand in (256, 128, 64, 32, 16, 8):
        if cand < batch and batch % cand == 0:
            return cand
    return batch  # no clean divisor: single block (correct, just unpipelined)


def vae_forward_pallas(w_packed, b_packed, layout, state, action, eps):
    batch = state.shape[0]
    latent, state_dim = layout["latent"], layout["state"]
    out_w = layout["out_width"]

    # one lane-dense (batch, 128) f32 activation slab: eps | 0 | action | state | 0
    gap = layout["act_off"] - latent
    tail = LANES - (layout["st_off"] + state_dim)
    in_slab = jnp.concatenate(
        [eps.astype(jnp.float32),
         jnp.zeros((batch, gap), jnp.float32),
         action.astype(jnp.float32),
         state.astype(jnp.float32),
         jnp.zeros((batch, tail), jnp.float32)], axis=1)

    tile_b = _pick_tile_b(batch)
    grid = (batch // tile_b,)
    ns, br = w_packed.shape[0], b_packed.shape[0]

    out = pl.pallas_call(
        make_vae_forward_kernel(layout),
        out_shape=jax.ShapeDtypeStruct((batch, out_w), jnp.float32),
        grid=grid,
        in_specs=[
            pl.BlockSpec((tile_b, LANES), lambda i: (i, 0)),
            pl.BlockSpec((ns, LANES, LANES), lambda i: (0, 0, 0)),  # resident weights
            pl.BlockSpec((br, LANES), lambda i: (0, 0)),            # resident biases
        ],
        # output at its true width (2*latent + state_dim); block last dim ==
        # full array dim, so no 128-lane zero padding is ever written to HBM.
        out_specs=pl.BlockSpec((tile_b, out_w), lambda i: (i, 0)),
        compiler_params=pltpu.CompilerParams(dimension_semantics=("parallel",)),
    )(in_slab, w_packed, b_packed)

    mu = out[:, :latent]
    logvar = out[:, latent:2 * latent]
    recon = out[:, 2 * latent:]
    return recon, mu, logvar


# ----------------------------------------------------------------------------
# Pure-JAX reference (mirrors the kernel's bf16-matmul / f32-epilogue math).
# ----------------------------------------------------------------------------
def vae_forward_ref(params, state, action, eps):
    def dense(x, w, b):
        return jnp.dot(x.astype(jnp.bfloat16), w.astype(jnp.bfloat16),
                       preferred_element_type=jnp.float32) + b

    x = state
    for w, b in params["enc"]:
        x = _leaky_relu(dense(x, w, b))
    mu = dense(x, params["zm_w"], params["zm_b"])
    logvar = dense(x, params["zv_w"], params["zv_b"])
    z = mu + eps * jnp.exp(0.5 * logvar)
    h = (
        jnp.dot(z.astype(jnp.bfloat16), params["nz_wz"].astype(jnp.bfloat16),
                preferred_element_type=jnp.float32)
        + jnp.dot(action.astype(jnp.bfloat16), params["nz_wa"].astype(jnp.bfloat16),
                  preferred_element_type=jnp.float32)
        + params["nz_b"]
    )
    for i, (w, b) in enumerate(params["dec"]):
        h = dense(h, w, b)
        if i != len(params["dec"]) - 1:
            h = _leaky_relu(h)
    return h, mu, logvar


if __name__ == "__main__":
    STATE_DIM, LATENT_DIM, ACTION_DIM, BATCH = 32, 8, 4, 8

    key = jax.random.PRNGKey(0)
    kp, ks, ka, ke = jax.random.split(key, 4)

    params = init_vae_params(kp, STATE_DIM, LATENT_DIM, ACTION_DIM)
    state = jax.random.normal(ks, (BATCH, STATE_DIM), jnp.float32)
    action = jax.random.normal(ka, (BATCH, ACTION_DIM), jnp.float32)
    # eps for reparameterization is drawn on the host (deterministic) and fed
    # into the kernel, matching torch.randn_like(std) in spirit.
    # TODO(synk): in-kernel pltpu.prng_* sampling would remove the host draw.
    eps = jax.random.normal(ke, (BATCH, LATENT_DIM), jnp.float32)

    w_packed, b_packed, layout = pack_params(params)
    recon, mu, logvar = vae_forward_pallas(w_packed, b_packed, layout,
                                           state, action, eps)
    jax.block_until_ready((recon, mu, logvar))

    r_ref, mu_ref, lv_ref = vae_forward_ref(params, state, action, eps)
    assert recon.shape == (BATCH, STATE_DIM)
    assert mu.shape == (BATCH, LATENT_DIM) and logvar.shape == (BATCH, LATENT_DIM)
    assert jnp.allclose(mu, mu_ref, rtol=5e-3, atol=5e-3)
    assert jnp.allclose(logvar, lv_ref, rtol=5e-3, atol=5e-3)
    assert jnp.allclose(recon, r_ref, rtol=5e-3, atol=5e-3)

    print("KERNEL_OK")
</pallas_src>

<mosaic_0001>
module attributes {stable_mosaic.version = 11 : i64} {
  func.func @kernel(%arg0: i32, %arg1: memref<8x128xf32, #tpu.memory_space<vmem>>, %arg2: memref<13x128x128xbf16, #tpu.memory_space<vmem>>, %arg3: memref<16x128xf32, #tpu.memory_space<vmem>>, %arg4: memref<8x48xf32, #tpu.memory_space<vmem>>) attributes {dimension_semantics = [#tpu.dimension_semantics<parallel>], iteration_bounds = array<i64: 1>, scalar_prefetch = 0 : i64, scratch_operands = 0 : i64, tpu.core_type = #tpu.core_type<tc>, window_params = [{transform_indices = @transform_0, window_bounds = array<i64: 8, 128>}, {pipeline_mode = #tpu.pipeline_mode<synchronous>, transform_indices = @transform_1, window_bounds = array<i64: 13, 128, 128>}, {pipeline_mode = #tpu.pipeline_mode<synchronous>, transform_indices = @transform_2, window_bounds = array<i64: 16, 128>}, {transform_indices = @transform_3, window_bounds = array<i64: 8, 48>}]} {
    %c0 = arith.constant 0 : index
    %c0_0 = arith.constant 0 : index
    %0 = vector.load %arg1[%c0, %c0_0] : memref<8x128xf32, #tpu.memory_space<vmem>>, vector<8x128xf32>
    %1 = arith.truncf %0 : vector<8x128xf32> to vector<8x128xbf16>
    %c0_1 = arith.constant 0 : index
    %c0_2 = arith.constant 0 : index
    %c0_3 = arith.constant 0 : index
    %2 = vector.load %arg2[%c0_1, %c0_2, %c0_3] : memref<13x128x128xbf16, #tpu.memory_space<vmem>>, vector<1x128x128xbf16>
    %3 = vector.shape_cast %2 : vector<1x128x128xbf16> to vector<128x128xbf16>
    %cst = arith.constant dense<0.000000e+00> : vector<8x128xf32>
    %4 = tpu.matmul %1, %3, %cst {dimension_numbers = #tpu.dot_dimension_numbers<[1], [0], [0], [1], [0, 0, 1, 1], [], []>} : vector<8x128xbf16>, vector<128x128xbf16>, vector<8x128xf32> -> vector<8x128xf32>
    %c0_4 = arith.constant 0 : index
    %c0_5 = arith.constant 0 : index
    %5 = vector.load %arg3[%c0_4, %c0_5] : memref<16x128xf32, #tpu.memory_space<vmem>>, vector<1x128xf32>
    %6 = vector.broadcast %5 : vector<1x128xf32> to vector<8x128xf32>
    %7 = arith.addf %4, %6 : vector<8x128xf32>
    %cst_6 = arith.constant 0.00999999977 : f32
    %8 = vector.broadcast %cst_6 : f32 to vector<8x128xf32>
    %9 = arith.mulf %8, %7 : vector<8x128xf32>
    %10 = arith.maximumf %7, %9 : vector<8x128xf32>
    %11 = arith.truncf %10 : vector<8x128xf32> to vector<8x128xbf16>
    %c1 = arith.constant 1 : index
    %c0_7 = arith.constant 0 : index
    %c0_8 = arith.constant 0 : index
    %12 = vector.load %arg2[%c1, %c0_7, %c0_8] : memref<13x128x128xbf16, #tpu.memory_space<vmem>>, vector<1x128x128xbf16>
    %13 = vector.shape_cast %12 : vector<1x128x128xbf16> to vector<128x128xbf16>
    %cst_9 = arith.constant dense<0.000000e+00> : vector<8x128xf32>
    %14 = tpu.matmul %11, %13, %cst_9 {dimension_numbers = #tpu.dot_dimension_numbers<[1], [0], [0], [1], [0, 0, 1, 1], [], []>} : vector<8x128xbf16>, vector<128x128xbf16>, vector<8x128xf32> -> vector<8x128xf32>
    %c1_10 = arith.constant 1 : index
    %c0_11 = arith.constant 0 : index
    %15 = vector.load %arg3[%c1_10, %c0_11] : memref<16x128xf32, #tpu.memory_space<vmem>>, vector<1x128xf32>
    %16 = vector.broadcast %15 : vector<1x128xf32> to vector<8x128xf32>
    %17 = arith.addf %14, %16 : vector<8x128xf32>
    %cst_12 = arith.constant 0.00999999977 : f32
    %18 = vector.broadcast %cst_12 : f32 to vector<8x128xf32>
    %19 = arith.mulf %18, %17 : vector<8x128xf32>
    %20 = arith.maximumf %17, %19 : vector<8x128xf32>
    %21 = arith.truncf %20 : vector<8x128xf32> to vector<8x128xbf16>
    %c2 = arith.constant 2 : index
    %c0_13 = arith.constant 0 : index
    %c0_14 = arith.constant 0 : index
    %22 = vector.load %arg2[%c2, %c0_13, %c0_14] : memref<13x128x128xbf16, #tpu.memory_space<vmem>>, vector<1x128x128xbf16>
    %23 = vector.shape_cast %22 : vector<1x128x128xbf16> to vector<128x128xbf16>
    %cst_15 = arith.constant dense<0.000000e+00> : vector<8x128xf32>
    %24 = tpu.matmul %21, %23, %cst_15 {dimension_numbers = #tpu.dot_dimension_numbers<[1], [0], [0], [1], [0, 0, 1, 1], [], []>} : vector<8x128xbf16>, vector<128x128xbf16>, vector<8x128xf32> -> vector<8x128xf32>
    %c2_16 = arith.constant 2 : index
    %c0_17 = arith.constant 0 : index
    %25 = vector.load %arg3[%c2_16, %c0_17] : memref<16x128xf32, #tpu.memory_space<vmem>>, vector<1x128xf32>
    %26 = vector.broadcast %25 : vector<1x128xf32> to vector<8x128xf32>
    %27 = arith.addf %24, %26 : vector<8x128xf32>
    %cst_18 = arith.constant 0.00999999977 : f32
    %28 = vector.broadcast %cst_18 : f32 to vector<8x128xf32>
    %29 = arith.mulf %28, %27 : vector<8x128xf32>
    %30 = arith.maximumf %27, %29 : vector<8x128xf32>
    %31 = arith.truncf %30 : vector<8x128xf32> to vector<8x128xbf16>
    %c3 = arith.constant 3 : index
    %c0_19 = arith.constant 0 : index
    %c0_20 = arith.constant 0 : index
    %32 = vector.load %arg2[%c3, %c0_19, %c0_20] : memref<13x128x128xbf16, #tpu.memory_space<vmem>>, vector<1x128x128xbf16>
    %33 = vector.shape_cast %32 : vector<1x128x128xbf16> to vector<128x128xbf16>
    %cst_21 = arith.constant dense<0.000000e+00> : vector<8x128xf32>
    %34 = tpu.matmul %31, %33, %cst_21 {dimension_numbers = #tpu.dot_dimension_numbers<[1], [0], [0], [1], [0, 0, 1, 1], [], []>} : vector<8x128xbf16>, vector<128x128xbf16>, vector<8x128xf32> -> vector<8x128xf32>
    %c3_22 = arith.constant 3 : index
    %c0_23 = arith.constant 0 : index
    %35 = vector.load %arg3[%c3_22, %c0_23] : memref<16x128xf32, #tpu.memory_space<vmem>>, vector<1x128xf32>
    %36 = vector.broadcast %35 : vector<1x128xf32> to vector<8x128xf32>
    %37 = arith.addf %34, %36 : vector<8x128xf32>
    %cst_24 = arith.constant 0.00999999977 : f32
    %38 = vector.broadcast %cst_24 : f32 to vector<8x128xf32>
    %39 = arith.mulf %38, %37 : vector<8x128xf32>
    %40 = arith.maximumf %37, %39 : vector<8x128xf32>
    %41 = arith.truncf %40 : vector<8x128xf32> to vector<8x128xbf16>
    %c4 = arith.constant 4 : index
    %c0_25 = arith.constant 0 : index
    %c0_26 = arith.constant 0 : index
    %42 = vector.load %arg2[%c4, %c0_25, %c0_26] : memref<13x128x128xbf16, #tpu.memory_space<vmem>>, vector<1x128x128xbf16>
    %43 = vector.shape_cast %42 : vector<1x128x128xbf16> to vector<128x128xbf16>
    %cst_27 = arith.constant dense<0.000000e+00> : vector<8x128xf32>
    %44 = tpu.matmul %41, %43, %cst_27 {dimension_numbers = #tpu.dot_dimension_numbers<[1], [0], [0], [1], [0, 0, 1, 1], [], []>} : vector<8x128xbf16>, vector<128x128xbf16>, vector<8x128xf32> -> vector<8x128xf32>
    %c4_28 = arith.constant 4 : index
    %c0_29 = arith.constant 0 : index
    %45 = vector.load %arg3[%c4_28, %c0_29] : memref<16x128xf32, #tpu.memory_space<vmem>>, vector<1x128xf32>
    %46 = vector.broadcast %45 : vector<1x128xf32> to vector<8x128xf32>
    %47 = arith.addf %44, %46 : vector<8x128xf32>
    %cst_30 = arith.constant 0.00999999977 : f32
    %48 = vector.broadcast %cst_30 : f32 to vector<8x128xf32>
    %49 = arith.mulf %48, %47 : vector<8x128xf32>
    %50 = arith.maximumf %47, %49 : vector<8x128xf32>
    %51 = arith.truncf %50 : vector<8x128xf32> to vector<8x128xbf16>
    %c5 = arith.constant 5 : index
    %c0_31 = arith.constant 0 : index
    %c0_32 = arith.constant 0 : index
    %52 = vector.load %arg2[%c5, %c0_31, %c0_32] : memref<13x128x128xbf16, #tpu.memory_space<vmem>>, vector<1x128x128xbf16>
    %53 = vector.shape_cast %52 : vector<1x128x128xbf16> to vector<128x128xbf16>
    %cst_33 = arith.constant dense<0.000000e+00> : vector<8x128xf32>
    %54 = tpu.matmul %51, %53, %cst_33 {dimension_numbers = #tpu.dot_dimension_numbers<[1], [0], [0], [1], [0, 0, 1, 1], [], []>} : vector<8x128xbf16>, vector<128x128xbf16>, vector<8x128xf32> -> vector<8x128xf32>
    %c5_34 = arith.constant 5 : index
    %c0_35 = arith.constant 0 : index
    %55 = vector.load %arg3[%c5_34, %c0_35] : memref<16x128xf32, #tpu.memory_space<vmem>>, vector<1x128xf32>
    %56 = vector.broadcast %55 : vector<1x128xf32> to vector<8x128xf32>
    %57 = arith.addf %54, %56 : vector<8x128xf32>
    %58 = vector.extract_strided_slice %57 {offsets = [0, 0], sizes = [8, 16], strides = [1, 1]} : vector<8x128xf32> to vector<8x16xf32>
    %c0_36 = arith.constant 0 : index
    %c0_37 = arith.constant 0 : index
    %59 = vector.load %arg4[%c0_36, %c0_37] : memref<8x48xf32, #tpu.memory_space<vmem>>, vector<8x16xf32>
    tpu.vector_store %arg4[%c0_36, %c0_37], %58 {strides = array<i32>} : memref<8x48xf32, #tpu.memory_space<vmem>>, vector<8x16xf32>,
    %60 = vector.extract_strided_slice %57 {offsets = [0, 8], sizes = [8, 8], strides = [1, 1]} : vector<8x128xf32> to vector<8x8xf32>
    %cst_38 = arith.constant 0.000000e+00 : f32
    %61 = vector.broadcast %cst_38 : f32 to vector<8x120xf32>
    %62 = tpu.concatenate %60, %61 in 1 : vector<8x8xf32>, vector<8x120xf32> -> vector<8x128xf32>
    %c0_39 = arith.constant 0 : index
    %c0_40 = arith.constant 0 : index
    %63 = vector.load %arg1[%c0_39, %c0_40] : memref<8x128xf32, #tpu.memory_space<vmem>>, vector<8x128xf32>
    %cst_41 = arith.constant 5.000000e-01 : f32
    %64 = vector.broadcast %cst_41 : f32 to vector<8x128xf32>
    %65 = arith.mulf %64, %62 : vector<8x128xf32>
    %66 = math.exp %65 : vector<8x128xf32>
    %67 = arith.mulf %63, %66 : vector<8x128xf32>
    %68 = arith.addf %57, %67 : vector<8x128xf32>
    %69 = arith.truncf %68 : vector<8x128xf32> to vector<8x128xbf16>
    %c6 = arith.constant 6 : index
    %c0_42 = arith.constant 0 : index
    %c0_43 = arith.constant 0 : index
    %70 = vector.load %arg2[%c6, %c0_42, %c0_43] : memref<13x128x128xbf16, #tpu.memory_space<vmem>>, vector<1x128x128xbf16>
    %71 = vector.shape_cast %70 : vector<1x128x128xbf16> to vector<128x128xbf16>
    %cst_44 = arith.constant dense<0.000000e+00> : vector<8x128xf32>
    %72 = tpu.matmul %69, %71, %cst_44 {dimension_numbers = #tpu.dot_dimension_numbers<[1], [0], [0], [1], [0, 0, 1, 1], [], []>} : vector<8x128xbf16>, vector<128x128xbf16>, vector<8x128xf32> -> vector<8x128xf32>
    %c6_45 = arith.constant 6 : index
    %c0_46 = arith.constant 0 : index
    %73 = vector.load %arg3[%c6_45, %c0_46] : memref<16x128xf32, #tpu.memory_space<vmem>>, vector<1x128xf32>
    %74 = vector.broadcast %73 : vector<1x128xf32> to vector<8x128xf32>
    %75 = arith.addf %72, %74 : vector<8x128xf32>
    %76 = arith.truncf %75 : vector<8x128xf32> to vector<8x128xbf16>
    %c7 = arith.constant 7 : index
    %c0_47 = arith.constant 0 : index
    %c0_48 = arith.constant 0 : index
    %77 = vector.load %arg2[%c7, %c0_47, %c0_48] : memref<13x128x128xbf16, #tpu.memory_space<vmem>>, vector<1x128x128xbf16>
    %78 = vector.shape_cast %77 : vector<1x128x128xbf16> to vector<128x128xbf16>
    %cst_49 = arith.constant dense<0.000000e+00> : vector<8x128xf32>
    %79 = tpu.matmul %76, %78, %cst_49 {dimension_numbers = #tpu.dot_dimension_numbers<[1], [0], [0], [1], [0, 0, 1, 1], [], []>} : vector<8x128xbf16>, vector<128x128xbf16>, vector<8x128xf32> -> vector<8x128xf32>
    %c7_50 = arith.constant 7 : index
    %c0_51 = arith.constant 0 : index
    %80 = vector.load %arg3[%c7_50, %c0_51] : memref<16x128xf32, #tpu.memory_space<vmem>>, vector<1x128xf32>
    %81 = vector.broadcast %80 : vector<1x128xf32> to vector<8x128xf32>
    %82 = arith.addf %79, %81 : vector<8x128xf32>
    %cst_52 = arith.constant 0.00999999977 : f32
    %83 = vector.broadcast %cst_52 : f32 to vector<8x128xf32>
    %84 = arith.mulf %83, %82 : vector<8x128xf32>
    %85 = arith.maximumf %82, %84 : vector<8x128xf32>
    %86 = arith.truncf %85 : vector<8x128xf32> to vector<8x128xbf16>
    %c8 = arith.constant 8 : index
    %c0_53 = arith.constant 0 : index
    %c0_54 = arith.constant 0 : index
    %87 = vector.load %arg2[%c8, %c0_53, %c0_54] : memref<13x128x128xbf16, #tpu.memory_space<vmem>>, vector<1x128x128xbf16>
    %88 = vector.shape_cast %87 : vector<1x128x128xbf16> to vector<128x128xbf16>
    %cst_55 = arith.constant dense<0.000000e+00> : vector<8x128xf32>
    %89 = tpu.matmul %86, %88, %cst_55 {dimension_numbers = #tpu.dot_dimension_numbers<[1], [0], [0], [1], [0, 0, 1, 1], [], []>} : vector<8x128xbf16>, vector<128x128xbf16>, vector<8x128xf32> -> vector<8x128xf32>
    %c8_56 = arith.constant 8 : index
    %c0_57 = arith.constant 0 : index
    %90 = vector.load %arg3[%c8_56, %c0_57] : memref<16x128xf32, #tpu.memory_space<vmem>>, vector<1x128xf32>
    %91 = vector.broadcast %90 : vector<1x128xf32> to vector<8x128xf32>
    %92 = arith.addf %89, %91 : vector<8x128xf32>
    %cst_58 = arith.constant 0.00999999977 : f32
    %93 = vector.broadcast %cst_58 : f32 to vector<8x128xf32>
    %94 = arith.mulf %93, %92 : vector<8x128xf32>
    %95 = arith.maximumf %92, %94 : vector<8x128xf32>
    %96 = arith.truncf %95 : vector<8x128xf32> to vector<8x128xbf16>
    %c9 = arith.constant 9 : index
    %c0_59 = arith.constant 0 : index
    %c0_60 = arith.constant 0 : index
    %97 = vector.load %arg2[%c9, %c0_59, %c0_60] : memref<13x128x128xbf16, #tpu.memory_space<vmem>>, vector<1x128x128xbf16>
    %98 = vector.shape_cast %97 : vector<1x128x128xbf16> to vector<128x128xbf16>
    %cst_61 = arith.constant dense<0.000000e+00> : vector<8x128xf32>
    %99 = tpu.matmul %96, %98, %cst_61 {dimension_numbers = #tpu.dot_dimension_numbers<[1], [0], [0], [1], [0, 0, 1, 1], [], []>} : vector<8x128xbf16>, vector<128x128xbf16>, vector<8x128xf32> -> vector<8x128xf32>
    %c9_62 = arith.constant 9 : index
    %c0_63 = arith.constant 0 : index
    %100 = vector.load %arg3[%c9_62, %c0_63] : memref<16x128xf32, #tpu.memory_space<vmem>>, vector<1x128xf32>
    %101 = vector.broadcast %100 : vector<1x128xf32> to vector<8x128xf32>
    %102 = arith.addf %99, %101 : vector<8x128xf32>
    %cst_64 = arith.constant 0.00999999977 : f32
    %103 = vector.broadcast %cst_64 : f32 to vector<8x128xf32>
    %104 = arith.mulf %103, %102 : vector<8x128xf32>
    %105 = arith.maximumf %102, %104 : vector<8x128xf32>
    %106 = arith.truncf %105 : vector<8x128xf32> to vector<8x128xbf16>
    %c10 = arith.constant 10 : index
    %c0_65 = arith.constant 0 : index
    %c0_66 = arith.constant 0 : index
    %107 = vector.load %arg2[%c10, %c0_65, %c0_66] : memref<13x128x128xbf16, #tpu.memory_space<vmem>>, vector<1x128x128xbf16>
    %108 = vector.shape_cast %107 : vector<1x128x128xbf16> to vector<128x128xbf16>
    %cst_67 = arith.constant dense<0.000000e+00> : vector<8x128xf32>
    %109 = tpu.matmul %106, %108, %cst_67 {dimension_numbers = #tpu.dot_dimension_numbers<[1], [0], [0], [1], [0, 0, 1, 1], [], []>} : vector<8x128xbf16>, vector<128x128xbf16>, vector<8x128xf32> -> vector<8x128xf32>
    %c10_68 = arith.constant 10 : index
    %c0_69 = arith.constant 0 : index
    %110 = vector.load %arg3[%c10_68, %c0_69] : memref<16x128xf32, #tpu.memory_space<vmem>>, vector<1x128xf32>
    %111 = vector.broadcast %110 : vector<1x128xf32> to vector<8x128xf32>
    %112 = arith.addf %109, %111 : vector<8x128xf32>
    %cst_70 = arith.constant 0.00999999977 : f32
    %113 = vector.broadcast %cst_70 : f32 to vector<8x128xf32>
    %114 = arith.mulf %113, %112 : vector<8x128xf32>
    %115 = arith.maximumf %112, %114 : vector<8x128xf32>
    %116 = arith.truncf %115 : vector<8x128xf32> to vector<8x128xbf16>
    %c11 = arith.constant 11 : index
    %c0_71 = arith.constant 0 : index
    %c0_72 = arith.constant 0 : index
    %117 = vector.load %arg2[%c11, %c0_71, %c0_72] : memref<13x128x128xbf16, #tpu.memory_space<vmem>>, vector<1x128x128xbf16>
    %118 = vector.shape_cast %117 : vector<1x128x128xbf16> to vector<128x128xbf16>
    %cst_73 = arith.constant dense<0.000000e+00> : vector<8x128xf32>
    %119 = tpu.matmul %116, %118, %cst_73 {dimension_numbers = #tpu.dot_dimension_numbers<[1], [0], [0], [1], [0, 0, 1, 1], [], []>} : vector<8x128xbf16>, vector<128x128xbf16>, vector<8x128xf32> -> vector<8x128xf32>
    %c11_74 = arith.constant 11 : index
    %c0_75 = arith.constant 0 : index
    %120 = vector.load %arg3[%c11_74, %c0_75] : memref<16x128xf32, #tpu.memory_space<vmem>>, vector<1x128xf32>
    %121 = vector.broadcast %120 : vector<1x128xf32> to vector<8x128xf32>
    %122 = arith.addf %119, %121 : vector<8x128xf32>
    %cst_76 = arith.constant 0.00999999977 : f32
    %123 = vector.broadcast %cst_76 : f32 to vector<8x128xf32>
    %124 = arith.mulf %123, %122 : vector<8x128xf32>
    %125 = arith.maximumf %122, %124 : vector<8x128xf32>
    %126 = arith.truncf %125 : vector<8x128xf32> to vector<8x128xbf16>
    %c12 = arith.constant 12 : index
    %c0_77 = arith.constant 0 : index
    %c0_78 = arith.constant 0 : index
    %127 = vector.load %arg2[%c12, %c0_77, %c0_78] : memref<13x128x128xbf16, #tpu.memory_space<vmem>>, vector<1x128x128xbf16>
    %128 = vector.shape_cast %127 : vector<1x128x128xbf16> to vector<128x128xbf16>
    %cst_79 = arith.constant dense<0.000000e+00> : vector<8x128xf32>
    %129 = tpu.matmul %126, %128, %cst_79 {dimension_numbers = #tpu.dot_dimension_numbers<[1], [0], [0], [1], [0, 0, 1, 1], [], []>} : vector<8x128xbf16>, vector<128x128xbf16>, vector<8x128xf32> -> vector<8x128xf32>
    %c12_80 = arith.constant 12 : index
    %c0_81 = arith.constant 0 : index
    %130 = vector.load %arg3[%c12_80, %c0_81] : memref<16x128xf32, #tpu.memory_space<vmem>>, vector<1x128xf32>
    %131 = vector.broadcast %130 : vector<1x128xf32> to vector<8x128xf32>
    %132 = arith.addf %129, %131 : vector<8x128xf32>
    %133 = vector.extract_strided_slice %132 {offsets = [0, 16], sizes = [8, 32], strides = [1, 1]} : vector<8x128xf32> to vector<8x32xf32>
    %c0_82 = arith.constant 0 : index
    %c16 = arith.constant 16 : index
    %134 = vector.load %arg4[%c0_82, %c16] : memref<8x48xf32, #tpu.memory_space<vmem>>, vector<8x32xf32>
    tpu.vector_store %arg4[%c0_82, %c16], %133 {strides = array<i32>} : memref<8x48xf32, #tpu.memory_space<vmem>>, vector<8x32xf32>,
    return
  }
  func.func @transform_0(%arg0: i32) -> (i32, i32) {
    %c0_i32 = arith.constant 0 : i32
    %c0_i32_0 = arith.constant 0 : i32
    return %arg0, %c0_i32 : i32, i32
  }
  func.func @transform_1(%arg0: i32) -> (i32, i32, i32) {
    %c0_i32 = arith.constant 0 : i32
    %c0_i32_0 = arith.constant 0 : i32
    %c0_i32_1 = arith.constant 0 : i32
    %c0_i32_2 = arith.constant 0 : i32
    return %c0_i32, %c0_i32_0, %c0_i32_1 : i32, i32, i32
  }
  func.func @transform_2(%arg0: i32) -> (i32, i32) {
    %c0_i32 = arith.constant 0 : i32
    %c0_i32_0 = arith.constant 0 : i32
    %c0_i32_1 = arith.constant 0 : i32
    return %c0_i32, %c0_i32_0 : i32, i32
  }
  func.func @transform_3(%arg0: i32) -> (i32, i32) {
    %c0_i32 = arith.constant 0 : i32
    %c0_i32_0 = arith.constant 0 : i32
    return %arg0, %c0_i32 : i32, i32
  }
}

</mosaic_0001>

<bundles_post_ra>
// kernel: tpu_custom_call.1
= control target key start
LH: loop header
LB: loop body
LE: loop exit
PB: predicated region body
PF: predicated region fallthrough
CT: control target
= control target key end

     0   :  { %8 = vsyncpa [#allocation3], 0  ;;  %s2469_s0 = inlined_call_operand.hbm [shape: f32[8,128], index: 0, kind: input, shape index: {}]   ;;  %s2470_s1 = inlined_call_operand.hbm [shape: bf16[13,128,128], index: 1, kind: input, shape index: {}]   ;;  %s2471_s2 = inlined_call_operand.hbm [shape: f32[16,128], index: 2, kind: input, shape index: {}]   ;;  %s2472_s3 = inlined_call_operand.hbm [shape: f32[8,48], index: 3, kind: output, shape index: {}]  }
   0x1   :  { %9 = vsyncpa [#allocation6], 0 }
   0x2   :  { %10 = vsyncpa [#allocation4], 0  ;;  %s2255_s12 = smov [#allocation5]   ;;  %s2161_s16 = scalar_lea.hbm %s2470_s1, 13312 }
   0x3   :  { %s26_s13 = sshll.u32 %s2255_s12, 4  ;;  %p2162_p0 = scmp.ne.s32.totalorder %s2470_s1, %s2161_s16  ;;  %s27_s13 = int_to_ptr.vmem [resolvable:$true] %s26_s13 }
   0x4   :  { %p2165_p1 = scmp.lt.u32.totalorder %s2161_s16, %s2470_s1 }
   0x6   :  { %p2167_p2 = pnand %p2165_p1, %p2162_p0 }
   0x8   :  { %2170 = shalt.err (!%p2167_p2)
}
   0x9   :  { %s2171_s21 = scalar_lea.vmem %s27_s13, 13312  ;;  %p2176_p4 = scmp.lt.s32.totalorder %s27_s13, %s27_s13 }
   0xa   :  { %p2172_p3 = scmp.ne.s32.totalorder %s27_s13, %s2171_s21  ;;  %p2177_p5 = scmp.lt.s32.totalorder %s2171_s21, %s2171_s21 }
   0xc   :  { %p2178_p6 = por %p2177_p5, %p2176_p4 }
   0xe   :  { %p2179_p7 = pnand %p2178_p6, %p2172_p3 }
  0x10   :  { %2182 = shalt.err (!%p2179_p7)
}
  0x11   :  { %s2256_s22 = smov 64   ;;  %s2257_s23 = smov 4  }
  0x12   :  { %32 = dma.hbm_to_vmem [thread:$0]  %s2470_s1, 13312, %s27_s13, [#allocation6], %s2256_s22, %s2256_s22, %s2257_s23  }
  0x13   :  { %s2258_s26 = smov [#allocation2]   ;;  %s2259_s28 = smov [#allocation7]  }
  0x14   :  { %s17_s27 = sshll.u32 %s2258_s26, 4  ;;  %s38_s29 = sshll.u32 %s2259_s28, 4  ;;  %s18_s27 = int_to_ptr.vmem [resolvable:$true] %s17_s27  ;;  %s39_s29 = int_to_ptr.vmem [resolvable:$true] %s38_s29 }
  0x15   :  { %s2183_s5 = scalar_lea.hbm %s2469_s0, 128 }
  0x16   :  { %p2184_p8 = scmp.ne.s32.totalorder %s2469_s0, %s2183_s5  ;;  %p2187_p9 = scmp.lt.u32.totalorder %s2183_s5, %s2469_s0 }
  0x18   :  { %p2189_p10 = pnand %p2187_p9, %p2184_p8 }
  0x1a   :  { %2192 = shalt.err (!%p2189_p10)
}
  0x1b   :  { %s2193_s1 = scalar_lea.vmem %s18_s27, 128  ;;  %p2198_p12 = scmp.lt.s32.totalorder %s18_s27, %s18_s27 }
  0x1c   :  { %p2194_p11 = scmp.ne.s32.totalorder %s18_s27, %s2193_s1  ;;  %p2199_p13 = scmp.lt.s32.totalorder %s2193_s1, %s2193_s1 }
  0x1e   :  { %p2200_p0 = por %p2199_p13, %p2198_p12 }
  0x20   :  { %p2201_p1 = pnand %p2200_p0, %p2194_p11 }
  0x22   :  { %2204 = shalt.err (!%p2201_p1)
}
  0x23   :  { %20 = dma.hbm_to_vmem [thread:$0]  %s2469_s0, 128, %s18_s27, [#allocation3]  }
  0x24   :  { %s2205_s14 = scalar_lea.hbm %s2471_s2, 256 }
  0x25   :  { %p2206_p2 = scmp.ne.s32.totalorder %s2471_s2, %s2205_s14  ;;  %p2209_p3 = scmp.lt.u32.totalorder %s2205_s14, %s2471_s2 }
  0x27   :  { %p2211_p4 = pnand %p2209_p3, %p2206_p2 }
  0x29   :  { %2214 = shalt.err (!%p2211_p4)
}
  0x2a   :  { %s2215_s19 = scalar_lea.vmem %s39_s29, 256  ;;  %p2220_p6 = scmp.lt.s32.totalorder %s39_s29, %s39_s29 }
  0x2b   :  { %p2216_p5 = scmp.ne.s32.totalorder %s39_s29, %s2215_s19  ;;  %p2221_p7 = scmp.lt.s32.totalorder %s2215_s19, %s2215_s19 }
  0x2d   :  { %p2222_p8 = por %p2221_p7, %p2220_p6 }
  0x2f   :  { %p2223_p9 = pnand %p2222_p8, %p2216_p5 }
  0x31   :  { %2226 = shalt.err (!%p2223_p9)
}
  0x32   :  { %s2260_s0 = smov 128   ;;  %s2261_s20 = smov 8  }
  0x33   :  { %44 = dma.hbm_to_vmem [thread:$0]  %s2471_s2, 256, %s39_s29, [#allocation6], %s2260_s0, %s2260_s0, %s2261_s20  }
  0x34   :  { %2249 = dma.done.wait [#allocation3], 128  }
  0x35   :  { %2250 = vsyncadd [#allocation3], 4294967168 }
  0x36   :  { %2251 = dma.done.wait [#allocation6], 13568  }
  0x37   :  { %2252 = vsyncadd [#allocation6], 4294953728  ;;  %v2262_v0 = vmov 0.0   ;;  %vm2263_vm0 = vmmov 0   ;;  %v2055_v1 = vld [vmem:[#allocation5] sm:$0xff]   ;;  %v2056_v2 = vld [vmem:[#allocation5 + $0x8] sm:$0xff]  }
  0x38   :  { %1784 = vmatprep.subr.bf16.mxu0 %v2262_v0  ;;  %1800 = vmatprep.mubr.msk.bf16.mxu0 %vm2263_vm0, %v2262_v0  ;;  %v2057_v3 = vld [vmem:[#allocation5 + $0x10] sm:$0xff]   ;;  %v2063_v4 = vld [vmem:[#allocation5 + $0x40] sm:$0xff]   ;;  %v2058_v5 = vld [vmem:[#allocation5 + $0x18] sm:$0xff]   ;;  %vm731_vm1 = vcmask 130048   ;;  %s2264_s2 = smov 120   ;;  %vm737_vm2 = vcmask 64512  }
  0x39   :  { %1804 = vmatprep.subr.bf16.mxu1 %v2262_v0  ;;  %1820 = vmatprep.mubr.msk.bf16.mxu1 %vm2263_vm0, %v2262_v0  ;;  %v2064_v6 = vld [vmem:[#allocation5 + $0x48] sm:$0xff]   ;;  %v2059_v7 = vld [vmem:[#allocation5 + $0x20] sm:$0xff]   ;;  %v2065_v8 = vld [vmem:[#allocation5 + $0x50] sm:$0xff]   ;;  %s2265_s23 = smov [#allocation8]   ;;  %vm1532_vm3 = vcmask 392320  }
  0x3a   :  { %1785 = vmatpush3.bf16.msra.mxu0 %v2055_v1  ;;  %1805 = vmatpush3.bf16.msra.mxu1 %v2063_v4  ;;  %v2060_v9 = vld [vmem:[#allocation5 + $0x28] sm:$0xff]   ;;  %v2066_v10 = vld [vmem:[#allocation5 + $0x58] sm:$0xff]   ;;  %v2061_v11 = vld [vmem:[#allocation5 + $0x30] sm:$0xff]   ;;  %s1540_s24 = sshll.u32 %s2265_s23, 4  ;;  %s1541_s24 = int_to_ptr.vmem [resolvable:$true] %s1540_s24 }
  0x3b   :  { %1786 = vmatprep.subr.bf16.mxu0 %v2262_v0  ;;  %1806 = vmatprep.subr.bf16.mxu1 %v2262_v0  ;;  %v2067_v12 = vld [vmem:[#allocation5 + $0x60] sm:$0xff]   ;;  %v2062_v13 = vld [vmem:[#allocation5 + $0x38] sm:$0xff]   ;;  %v2068_v15 = vld [vmem:[#allocation5 + $0x68] sm:$0xff]   ;;  %s2227_s25 = scalar_lea.vmem %s1541_s24, 128  ;;  %p2232_p11 = scmp.lt.s32.totalorder %s1541_s24, %s1541_s24 }
  0x3c   :  { %v2337_v14 = vld [vmem:[#allocation2] sm:$0xff]  ;;  %v2069_v17 = vld [vmem:[#allocation5 + $0x70] sm:$0xff]   ;;  %v2071_v19 = vld [vmem:[#allocation5 + $0x80] sm:$0xff]   ;;  %p2228_p10 = scmp.ne.s32.totalorder %s1541_s24, %s2227_s25  ;;  %p2233_p12 = scmp.lt.s32.totalorder %s2227_s25, %s2227_s25 }
  0x3d   :  { %v56_v16 = vpack.c.bf16 %v2337_v14, %v2337_v14  ;;  %v2070_v18 = vld [vmem:[#allocation5 + $0x78] sm:$0xff]   ;;  %v2072_v20 = vld [vmem:[#allocation5 + $0x88] sm:$0xff]   ;;  %v2073_v21 = vld [vmem:[#allocation5 + $0x90] sm:$0xff]  }
  0x3e   :  { %1787 = vmatpush3.bf16.msra.mxu0 %v2056_v2  ;;  %1807 = vmatpush3.bf16.msra.mxu1 %v2064_v6  ;;  %v2074_v22 = vld [vmem:[#allocation5 + $0x98] sm:$0xff]   ;;  %v2075_v23 = vld [vmem:[#allocation5 + $0xa0] sm:$0xff]   ;;  %v2076_v24 = vld [vmem:[#allocation5 + $0xa8] sm:$0xff]   ;;  %p2234_p13 = por %p2233_p12, %p2232_p11 }
  0x3f   :  { %1788 = vmatprep.subr.bf16.mxu0 %v2262_v0  ;;  %1808 = vmatprep.subr.bf16.mxu1 %v2262_v0  ;;  %v1550_v25 = vld [vmem:[#allocation7] ss:$0 sm:$0xff]  ;;  %v2077_v34 = vld [vmem:[#allocation5 + $0xb0] sm:$0xff]   ;;  %v2078_v35 = vld [vmem:[#allocation5 + $0xb8] sm:$0xff]  }
  0x40   :  { %v2079_v36 = vld [vmem:[#allocation5 + $0xc0] sm:$0xff]   ;;  %v2080_v37 = vld [vmem:[#allocation5 + $0xc8] sm:$0xff]   ;;  %v2081_v38 = vld [vmem:[#allocation5 + $0xd0] sm:$0xff]   ;;  %p2235_p0 = pnand %p2234_p13, %p2228_p10 }
  0x41   :  { %v2082_v39 = vld [vmem:[#allocation5 + $0xd8] sm:$0xff]   ;;  %v2083_v40 = vld [vmem:[#allocation5 + $0xe0] sm:$0xff]   ;;  %v2084_v41 = vld [vmem:[#allocation5 + $0xe8] sm:$0xff]  }
  0x42   :  { %1789 = vmatpush3.bf16.msra.mxu0 %v2057_v3  ;;  %1809 = vmatpush3.bf16.msra.mxu1 %v2065_v8  ;;  %v1559_v42 = vld [vmem:[#allocation7 + $0x1] ss:$0 sm:$0xff]  ;;  %v2085_v51 = vld [vmem:[#allocation5 + $0xf0] sm:$0xff]   ;;  %v2086_v52 = vld [vmem:[#allocation5 + $0xf8] sm:$0xff]  }
  0x43   :  { %1790 = vmatprep.subr.bf16.mxu0 %v2262_v0  ;;  %1810 = vmatprep.subr.bf16.mxu1 %v2262_v0  ;;  %v2087_v53 = vld [vmem:[#allocation5 + $0x100] sm:$0xff]   ;;  %v2088_v54 = vld [vmem:[#allocation5 + $0x108] sm:$0xff]   ;;  %v2089_v55 = vld [vmem:[#allocation5 + $0x110] sm:$0xff]  }
  0x44   :  { %v2090_v56 = vld [vmem:[#allocation5 + $0x118] sm:$0xff]   ;;  %v2091_v57 = vld [vmem:[#allocation5 + $0x120] sm:$0xff]   ;;  %v2092_v58 = vld [vmem:[#allocation5 + $0x128] sm:$0xff]  }
  0x45   :  { %v1568_v59 = vld [vmem:[#allocation7 + $0x2] ss:$0 sm:$0xff]  ;;  %v2094_v6 = vld [vmem:[#allocation5 + $0x138] sm:$0xff]   ;;  %v2096_v8 = vld [vmem:[#allocation5 + $0x148] sm:$0xff]  }
  0x46   :  { %1791 = vmatpush3.bf16.msra.mxu0 %v2058_v5  ;;  %1811 = vmatpush3.bf16.msra.mxu1 %v2066_v10  ;;  %v2093_v5 = vld [vmem:[#allocation5 + $0x130] sm:$0xff]   ;;  %v2098_v10 = vld [vmem:[#allocation5 + $0x158] sm:$0xff]  }
  0x47   :  { %1792 = vmatprep.subr.bf16.mxu0 %v2262_v0  ;;  %1812 = vmatprep.subr.bf16.mxu1 %v2262_v0 }
  0x4a   :  { %1793 = vmatpush3.bf16.msra.mxu0 %v2059_v7  ;;  %1813 = vmatpush3.bf16.msra.mxu1 %v2067_v12  ;;  %v2095_v7 = vld [vmem:[#allocation5 + $0x140] sm:$0xff]   ;;  %v2100_v12 = vld [vmem:[#allocation5 + $0x168] sm:$0xff]  }
  0x4b   :  { %1794 = vmatprep.subr.bf16.mxu0 %v2262_v0  ;;  %1814 = vmatprep.subr.bf16.mxu1 %v2262_v0 }
  0x4e   :  { %1795 = vmatpush3.bf16.msra.mxu0 %v2060_v9  ;;  %1815 = vmatpush3.bf16.msra.mxu1 %v2068_v15  ;;  %v2097_v9 = vld [vmem:[#allocation5 + $0x150] sm:$0xff]  }
  0x4f   :  { %1796 = vmatprep.subr.bf16.mxu0 %v2262_v0  ;;  %1816 = vmatprep.subr.bf16.mxu1 %v2262_v0 }
  0x52   :  { %1797 = vmatpush3.bf16.msra.mxu0 %v2061_v11  ;;  %1817 = vmatpush3.bf16.msra.mxu1 %v2069_v17  ;;  %v2099_v11 = vld [vmem:[#allocation5 + $0x160] sm:$0xff]  }
  0x53   :  { %1798 = vmatprep.subr.bf16.mxu0 %v2262_v0  ;;  %1818 = vmatprep.subr.bf16.mxu1 %v2262_v0 }
  0x56   :  { %1799 = vmatpush3.bf16.msra.mxu0 %v2062_v13  ;;  %1819 = vmatpush3.bf16.msra.mxu1 %v2070_v18  ;;  %v1577_v13 = vld [vmem:[#allocation7 + $0x3] ss:$0 sm:$0xff] }
  0x57   :  { %1824 = vmatprep.subr.bf16.mxu0 %v2262_v0  ;;  %1844 = vmatprep.subr.bf16.mxu1 %v2262_v0 }
  0x59   :  { %1801 = vmatmul.mubr.bf16.vlgmr.msra.gmra.mrb[0].mxu0 %v56_v16 }
  0x5a   :  { %1840 = vmatprep.mubr.msk.bf16.mxu0 %vm2263_vm0, %v2262_v0  ;;  %1825 = vmatpush3.bf16.msra.mxu0 %v2071_v19 }
  0x5b   :  { %1826 = vmatprep.subr.bf16.mxu0 %v2262_v0 }
  0x5e   :  { %1827 = vmatpush3.bf16.msra.mxu0 %v2072_v20 }
  0x5f   :  { %1828 = vmatprep.subr.bf16.mxu0 %v2262_v0 }
  0x62   :  { %1829 = vmatpush3.bf16.msra.mxu0 %v2073_v21 }
  0x63   :  { %1830 = vmatprep.subr.bf16.mxu0 %v2262_v0 }
  0x66   :  { %1831 = vmatpush3.bf16.msra.mxu0 %v2074_v22 }
  0x67   :  { %1832 = vmatprep.subr.bf16.mxu0 %v2262_v0 }
  0x6a   :  { %1833 = vmatpush3.bf16.msra.mxu0 %v2075_v23  ;;  %v2101_v23 = vld [vmem:[#allocation5 + $0x170] sm:$0xff]  }
  0x6b   :  { %1834 = vmatprep.subr.bf16.mxu0 %v2262_v0 }
  0x6e   :  { %1835 = vmatpush3.bf16.msra.mxu0 %v2076_v24  ;;  %v2102_v24 = vld [vmem:[#allocation5 + $0x178] sm:$0xff]  }
  0x6f   :  { %1836 = vmatprep.subr.bf16.mxu0 %v2262_v0 }
  0x72   :  { %1837 = vmatpush3.bf16.msra.mxu0 %v2077_v34  ;;  %v2103_v34 = vld [vmem:[#allocation5 + $0x180] sm:$0xff]  }
  0x73   :  { %1838 = vmatprep.subr.bf16.mxu0 %v2262_v0 }
  0x76   :  { %1839 = vmatpush3.bf16.msra.mxu0 %v2078_v35  ;;  %v2104_v35 = vld [vmem:[#allocation5 + $0x188] sm:$0xff]  }
  0x77   :  { %1864 = vmatprep.subr.bf16.mxu0 %v2262_v0 }
 0x12c   :  { %v160_v26 = vpop.f32.mrb[0].mxu0 }
 0x12d   :  { %v161_v27 = vadd.f32 %v1550_v25, %v160_v26  ;;  %v1802_v28 = vpop.f32.mrb[1].mxu0  ;;  %v1586_v25 = vld [vmem:[#allocation7 + $0x4] ss:$0 sm:$0xff] }
 0x12e   :  { %v163_v29 = vpop.f32.mrb[2].mxu0 }
 0x12f   :  { %v166_v30 = vmul.f32 0.01, %v161_v27  ;;  %v1803_v31 = vpop.f32.mrb[3].mxu0 }
 0x131   :  { %v167_v32 = vmax.f32 %v161_v27, %v166_v30 }
 0x133   :  { %v168_v33 = vpack.c.bf16 %v167_v32, %v167_v32 }
 0x135   :  { %1821 = vmatmul.mubr.bf16.vlgmr.msra.gmra.mrb[0].mxu1 %v168_v33 }
 0x136   :  { %1860 = vmatprep.mubr.msk.bf16.mxu1 %vm2263_vm0, %v2262_v0  ;;  %1845 = vmatpush3.bf16.msra.mxu1 %v2079_v36  ;;  %v2105_v36 = vld [vmem:[#allocation5 + $0x190] sm:$0xff]  }
 0x137   :  { %1846 = vmatprep.subr.bf16.mxu1 %v2262_v0 }
 0x13a   :  { %1847 = vmatpush3.bf16.msra.mxu1 %v2080_v37  ;;  %v2106_v37 = vld [vmem:[#allocation5 + $0x198] sm:$0xff]  }
 0x13b   :  { %1848 = vmatprep.subr.bf16.mxu1 %v2262_v0 }
 0x13e   :  { %1849 = vmatpush3.bf16.msra.mxu1 %v2081_v38  ;;  %v2107_v38 = vld [vmem:[#allocation5 + $0x1a0] sm:$0xff]  }
 0x13f   :  { %1850 = vmatprep.subr.bf16.mxu1 %v2262_v0 }
 0x142   :  { %1851 = vmatpush3.bf16.msra.mxu1 %v2082_v39  ;;  %v2108_v39 = vld [vmem:[#allocation5 + $0x1a8] sm:$0xff]  }
 0x143   :  { %1852 = vmatprep.subr.bf16.mxu1 %v2262_v0 }
 0x146   :  { %1853 = vmatpush3.bf16.msra.mxu1 %v2083_v40  ;;  %v1595_v40 = vld [vmem:[#allocation7 + $0x5] ss:$0 sm:$0xff] }
 0x147   :  { %1854 = vmatprep.subr.bf16.mxu1 %v2262_v0 }
 0x14a   :  { %1855 = vmatpush3.bf16.msra.mxu1 %v2084_v41 }
 0x14b   :  { %1856 = vmatprep.subr.bf16.mxu1 %v2262_v0 }
 0x14e   :  { %1857 = vmatpush3.bf16.msra.mxu1 %v2085_v51  ;;  %v2114_v51 = vld [vmem:[#allocation5 + $0x1d8] sm:$0xff]  }
 0x14f   :  { %1858 = vmatprep.subr.bf16.mxu1 %v2262_v0 }
 0x152   :  { %1859 = vmatpush3.bf16.msra.mxu1 %v2086_v52  ;;  %v2115_v52 = vld [vmem:[#allocation5 + $0x1e0] sm:$0xff]  }
 0x153   :  { %1884 = vmatprep.subr.bf16.mxu1 %v2262_v0 }
 0x208   :  { %v273_v43 = vpop.f32.mrb[0].mxu1 }
 0x209   :  { %v274_v44 = vadd.f32 %v1559_v42, %v273_v43  ;;  %v1822_v45 = vpop.f32.mrb[1].mxu1 }
 0x20a   :  { %v276_v46 = vpop.f32.mrb[2].mxu1 }
 0x20b   :  { %v279_v47 = vmul.f32 0.01, %v274_v44  ;;  %v1823_v48 = vpop.f32.mrb[3].mxu1 }
 0x20c   :  { %v2111_v48 = vld [vmem:[#allocation5 + $0x1c0] sm:$0xff]  }
 0x20d   :  { %v280_v49 = vmax.f32 %v274_v44, %v279_v47  ;;  %v2109_v44 = vld [vmem:[#allocation5 + $0x1b0] sm:$0xff]   ;;  %v2110_v47 = vld [vmem:[#allocation5 + $0x1b8] sm:$0xff]  }
 0x20f   :  { %v281_v50 = vpack.c.bf16 %v280_v49, %v280_v49  ;;  %v2112_v49 = vld [vmem:[#allocation5 + $0x1c8] sm:$0xff]  }
 0x211   :  { %1841 = vmatmul.mubr.bf16.vlgmr.msra.gmra.mrb[4].mxu0 %v281_v50  ;;  %v2113_v50 = vld [vmem:[#allocation5 + $0x1d0] sm:$0xff]  }
 0x212   :  { %1880 = vmatprep.mubr.msk.bf16.mxu0 %vm2263_vm0, %v2262_v0  ;;  %1865 = vmatpush3.bf16.msra.mxu0 %v2087_v53  ;;  %v2116_v53 = vld [vmem:[#allocation5 + $0x1e8] sm:$0xff]  }
 0x213   :  { %1866 = vmatprep.subr.bf16.mxu0 %v2262_v0 }
 0x216   :  { %1867 = vmatpush3.bf16.msra.mxu0 %v2088_v54  ;;  %v2117_v54 = vld [vmem:[#allocation5 + $0x1f0] sm:$0xff]  }
 0x217   :  { %1868 = vmatprep.subr.bf16.mxu0 %v2262_v0 }
 0x21a   :  { %1869 = vmatpush3.bf16.msra.mxu0 %v2089_v55 }
 0x21b   :  { %1870 = vmatprep.subr.bf16.mxu0 %v2262_v0 }
 0x21e   :  { %1871 = vmatpush3.bf16.msra.mxu0 %v2090_v56 }
 0x21f   :  { %1872 = vmatprep.subr.bf16.mxu0 %v2262_v0 }
 0x222   :  { %1873 = vmatpush3.bf16.msra.mxu0 %v2091_v57 }
 0x223   :  { %1874 = vmatprep.subr.bf16.mxu0 %v2262_v0 }
 0x226   :  { %1875 = vmatpush3.bf16.msra.mxu0 %v2092_v58 }
 0x227   :  { %1876 = vmatprep.subr.bf16.mxu0 %v2262_v0 }
 0x22a   :  { %1877 = vmatpush3.bf16.msra.mxu0 %v2093_v5  ;;  %v2124_v5 = vld [vmem:[#allocation5 + $0x228] sm:$0xff]  }
 0x22b   :  { %1878 = vmatprep.subr.bf16.mxu0 %v2262_v0 }
 0x22e   :  { %1879 = vmatpush3.bf16.msra.mxu0 %v2094_v6  ;;  %v1604_v6 = vld [vmem:[#allocation7 + $0x6] ss:$0 sm:$0xff] }
 0x22f   :  { %1904 = vmatprep.subr.bf16.mxu0 %v2262_v0 }
 0x2e4   :  { %v386_v60 = vpop.f32.mrb[4].mxu0 }
 0x2e5   :  { %v387_v61 = vadd.f32 %v1568_v59, %v386_v60  ;;  %v1842_v62 = vpop.f32.mrb[5].mxu0 }
 0x2e6   :  { %v389_v63 = vpop.f32.mrb[6].mxu0 }
 0x2e7   :  { %v392_v1 = vmul.f32 0.01, %v387_v61  ;;  %v1843_v2 = vpop.f32.mrb[7].mxu0  ;;  %v2118_v63 = vld [vmem:[#allocation5 + $0x1f8] sm:$0xff]  }
 0x2e8   :  { %v2120_v2 = vld [vmem:[#allocation5 + $0x208] sm:$0xff]  }
 0x2e9   :  { %v393_v3 = vmax.f32 %v387_v61, %v392_v1  ;;  %v2119_v1 = vld [vmem:[#allocation5 + $0x200] sm:$0xff]  }
 0x2eb   :  { %v394_v4 = vpack.c.bf16 %v393_v3, %v393_v3  ;;  %v2121_v3 = vld [vmem:[#allocation5 + $0x210] sm:$0xff]  }
 0x2ed   :  { %1861 = vmatmul.mubr.bf16.vlgmr.msra.gmra.mrb[4].mxu1 %v394_v4  ;;  %v2123_v4 = vld [vmem:[#allocation5 + $0x220] sm:$0xff]  }
 0x2ee   :  { %1900 = vmatprep.mubr.msk.bf16.mxu1 %vm2263_vm0, %v2262_v0  ;;  %1885 = vmatpush3.bf16.msra.mxu1 %v2095_v7 }
 0x2ef   :  { %1886 = vmatprep.subr.bf16.mxu1 %v2262_v0 }
 0x2f2   :  { %1887 = vmatpush3.bf16.msra.mxu1 %v2096_v8 }
 0x2f3   :  { %1888 = vmatprep.subr.bf16.mxu1 %v2262_v0 }
 0x2f6   :  { %1889 = vmatpush3.bf16.msra.mxu1 %v2097_v9 }
 0x2f7   :  { %1890 = vmatprep.subr.bf16.mxu1 %v2262_v0 }
 0x2fa   :  { %1891 = vmatpush3.bf16.msra.mxu1 %v2098_v10 }
 0x2fb   :  { %1892 = vmatprep.subr.bf16.mxu1 %v2262_v0 }
 0x2fe   :  { %1893 = vmatpush3.bf16.msra.mxu1 %v2099_v11 }
 0x2ff   :  { %1894 = vmatprep.subr.bf16.mxu1 %v2262_v0 }
 0x302   :  { %1895 = vmatpush3.bf16.msra.mxu1 %v2100_v12 }
 0x303   :  { %1896 = vmatprep.subr.bf16.mxu1 %v2262_v0 }
 0x306   :  { %1897 = vmatpush3.bf16.msra.mxu1 %v2101_v23 }
 0x307   :  { %1898 = vmatprep.subr.bf16.mxu1 %v2262_v0 }
 0x30a   :  { %1899 = vmatpush3.bf16.msra.mxu1 %v2102_v24 }
 0x30b   :  { %1924 = vmatprep.subr.bf16.mxu1 %v2262_v0 }
 0x3c0   :  { %v499_v15 = vpop.f32.mrb[4].mxu1 }
 0x3c1   :  { %v500_v16 = vadd.f32 %v1577_v13, %v499_v15  ;;  %v1862_v17 = vpop.f32.mrb[5].mxu1  ;;  %v2125_v13 = vld [vmem:[#allocation5 + $0x230] sm:$0xff]   ;;  %v2126_v15 = vld [vmem:[#allocation5 + $0x238] sm:$0xff]  }
 0x3c2   :  { %v502_v18 = vpop.f32.mrb[6].mxu1  ;;  %v2128_v17 = vld [vmem:[#allocation5 + $0x248] sm:$0xff]  }
 0x3c3   :  { %v505_v19 = vmul.f32 0.01, %v500_v16  ;;  %v1863_v20 = vpop.f32.mrb[7].mxu1  ;;  %v2129_v18 = vld [vmem:[#allocation5 + $0x250] sm:$0xff]  }
 0x3c4   :  { %v2131_v20 = vld [vmem:[#allocation5 + $0x260] sm:$0xff]  }
 0x3c5   :  { %v506_v21 = vmax.f32 %v500_v16, %v505_v19  ;;  %v2127_v16 = vld [vmem:[#allocation5 + $0x240] sm:$0xff]   ;;  %v2130_v19 = vld [vmem:[#allocation5 + $0x258] sm:$0xff]  }
 0x3c7   :  { %v507_v22 = vpack.c.bf16 %v506_v21, %v506_v21  ;;  %v2132_v21 = vld [vmem:[#allocation5 + $0x268] sm:$0xff]  }
 0x3c9   :  { %1881 = vmatmul.mubr.bf16.vlgmr.msra.gmra.mrb[8].mxu0 %v507_v22  ;;  %v1613_v22 = vld [vmem:[#allocation7 + $0x7] ss:$0 sm:$0xff] }
 0x3ca   :  { %1920 = vmatprep.mubr.msk.bf16.mxu0 %vm2263_vm0, %v2262_v0  ;;  %1905 = vmatpush3.bf16.msra.mxu0 %v2103_v34  ;;  %v2136_v34 = vld [vmem:[#allocation5 + $0x288] sm:$0xff]  }
 0x3cb   :  { %1906 = vmatprep.subr.bf16.mxu0 %v2262_v0 }
 0x3ce   :  { %1907 = vmatpush3.bf16.msra.mxu0 %v2104_v35  ;;  %v2137_v35 = vld [vmem:[#allocation5 + $0x290] sm:$0xff]  }
 0x3cf   :  { %1908 = vmatprep.subr.bf16.mxu0 %v2262_v0 }
 0x3d2   :  { %1909 = vmatpush3.bf16.msra.mxu0 %v2105_v36  ;;  %v2138_v36 = vld [vmem:[#allocation5 + $0x298] sm:$0xff]  }
 0x3d3   :  { %1910 = vmatprep.subr.bf16.mxu0 %v2262_v0 }
 0x3d6   :  { %1911 = vmatpush3.bf16.msra.mxu0 %v2106_v37  ;;  %v2139_v37 = vld [vmem:[#allocation5 + $0x2a0] sm:$0xff]  }
 0x3d7   :  { %1912 = vmatprep.subr.bf16.mxu0 %v2262_v0 }
 0x3da   :  { %1913 = vmatpush3.bf16.msra.mxu0 %v2107_v38  ;;  %v2140_v38 = vld [vmem:[#allocation5 + $0x2a8] sm:$0xff]  }
 0x3db   :  { %1914 = vmatprep.subr.bf16.mxu0 %v2262_v0 }
 0x3de   :  { %1915 = vmatpush3.bf16.msra.mxu0 %v2108_v39  ;;  %v1622_v39 = vld [vmem:[#allocation7 + $0x8] ss:$0 sm:$0xff] }
 0x3df   :  { %1916 = vmatprep.subr.bf16.mxu0 %v2262_v0 }
 0x3e2   :  { %1917 = vmatpush3.bf16.msra.mxu0 %v2109_v44 }
 0x3e3   :  { %1918 = vmatprep.subr.bf16.mxu0 %v2262_v0 }
 0x3e6   :  { %1919 = vmatpush3.bf16.msra.mxu0 %v2110_v47 }
 0x3e7   :  { %1944 = vmatprep.subr.bf16.mxu0 %v2262_v0 }
 0x49c   :  { %v612_v26 = vpop.f32.mrb[8].mxu0 }
 0x49d   :  { %v613_v27 = vadd.f32 %v1586_v25, %v612_v26  ;;  %v1882_v28 = vpop.f32.mrb[9].mxu0 }
 0x49e   :  { %v615_v29 = vpop.f32.mrb[10].mxu0 }
 0x49f   :  { %v618_v30 = vmul.f32 0.01, %v613_v27  ;;  %v1883_v31 = vpop.f32.mrb[11].mxu0 }
 0x4a0   :  { %v2133_v31 = vld [vmem:[#allocation5 + $0x270] sm:$0xff]  }
 0x4a1   :  { %v619_v32 = vmax.f32 %v613_v27, %v618_v30 }
 0x4a3   :  { %v620_v33 = vpack.c.bf16 %v619_v32, %v619_v32  ;;  %v2134_v32 = vld [vmem:[#allocation5 + $0x278] sm:$0xff]  }
 0x4a5   :  { %1901 = vmatmul.mubr.bf16.vlgmr.msra.gmra.mrb[8].mxu1 %v620_v33  ;;  %v2135_v33 = vld [vmem:[#allocation5 + $0x280] sm:$0xff]  }
 0x4a6   :  { %1940 = vmatprep.mubr.msk.bf16.mxu1 %vm2263_vm0, %v2262_v0  ;;  %1925 = vmatpush3.bf16.msra.mxu1 %v2111_v48  ;;  %v2141_v48 = vld [vmem:[#allocation5 + $0x2b0] sm:$0xff]  }
 0x4a7   :  { %1926 = vmatprep.subr.bf16.mxu1 %v2262_v0 }
 0x4aa   :  { %1927 = vmatpush3.bf16.msra.mxu1 %v2112_v49  ;;  %v2142_v49 = vld [vmem:[#allocation5 + $0x2b8] sm:$0xff]  }
 0x4ab   :  { %1928 = vmatprep.subr.bf16.mxu1 %v2262_v0 }
 0x4ae   :  { %1929 = vmatpush3.bf16.msra.mxu1 %v2113_v50  ;;  %v2143_v50 = vld [vmem:[#allocation5 + $0x2c0] sm:$0xff]  }
 0x4af   :  { %1930 = vmatprep.subr.bf16.mxu1 %v2262_v0 }
 0x4b2   :  { %1931 = vmatpush3.bf16.msra.mxu1 %v2114_v51  ;;  %v2144_v51 = vld [vmem:[#allocation5 + $0x2c8] sm:$0xff]  }
 0x4b3   :  { %1932 = vmatprep.subr.bf16.mxu1 %v2262_v0 }
 0x4b6   :  { %1933 = vmatpush3.bf16.msra.mxu1 %v2115_v52  ;;  %v2145_v52 = vld [vmem:[#allocation5 + $0x2d0] sm:$0xff]  }
 0x4b7   :  { %1934 = vmatprep.subr.bf16.mxu1 %v2262_v0 }
 0x4ba   :  { %1935 = vmatpush3.bf16.msra.mxu1 %v2116_v53  ;;  %v2146_v53 = vld [vmem:[#allocation5 + $0x2d8] sm:$0xff]  }
 0x4bb   :  { %1936 = vmatprep.subr.bf16.mxu1 %v2262_v0 }
 0x4be   :  { %1937 = vmatpush3.bf16.msra.mxu1 %v2117_v54  ;;  %v2147_v54 = vld [vmem:[#allocation5 + $0x2e0] sm:$0xff]  }
 0x4bf   :  { %1938 = vmatprep.subr.bf16.mxu1 %v2262_v0 }
 0x4c2   :  { %1939 = vmatpush3.bf16.msra.mxu1 %v2118_v63 }
 0x4c3   :  { %1964 = vmatprep.subr.bf16.mxu1 %v2262_v0 }
 0x578   :  { %v725_v41 = vpop.f32.mrb[8].mxu1 }
 0x579   :  { %v726_v42 = vadd.f32 %v1595_v40, %v725_v41  ;;  %v1902_v43 = vpop.f32.mrb[9].mxu1 }
 0x57a   :  { %v728_v45 = vpop.f32.mrb[10].mxu1 }
 0x57b   :  { %732 = vst.msk [vmem:[#allocation8] sm:$0xff] %vm731_vm1, %v726_v42  ;;  %v1903_v46 = vpop.f32.mrb[11].mxu1  ;;  %734 = vrot.lane.b32.xlu0 %v726_v42, %s2264_s2 }
 0x5ed   :  { %v735_v55 = vpop.permute.xlu0 %734 }
 0x5ee   :  { %v738_v56 = vsel %vm737_vm2, %v735_v55, 0.0  ;;  %v2148_v55 = vld [vmem:[#allocation5 + $0x2e8] sm:$0xff]  }
 0x5ef   :  { %v740_v57 = vmul.f32 0.5, %v738_v56  ;;  %v1631_v56 = vld [vmem:[#allocation7 + $0x9] ss:$0 sm:$0xff] }
 0x5f1   :  { %v741_v58 = vmul.f32 1.442695, %v740_v57 }
 0x5f3   :  { %2159 = vpow2.f32 %v741_v58 }
 0x5fd   :  { %v2160_v59 = vpop.eup %2159 }
 0x5fe   :  { %v743_v60 = vmul.f32 %v2160_v59, %v2337_v14  ;;  %v2122_v14 = vld [vmem:[#allocation5 + $0x218] sm:$0xff]  }
 0x600   :  { %v744_v61 = vadd.f32 %v743_v60, %v726_v42 }
 0x602   :  { %v745_v62 = vpack.c.bf16 %v744_v61, %v744_v61 }
 0x604   :  { %1921 = vmatmul.mubr.bf16.vlgmr.msra.gmra.mrb[12].mxu0 %v745_v62 }
 0x605   :  { %1960 = vmatprep.mubr.msk.bf16.mxu0 %vm2263_vm0, %v2262_v0  ;;  %1945 = vmatpush3.bf16.msra.mxu0 %v2119_v1 }
 0x606   :  { %1946 = vmatprep.subr.bf16.mxu0 %v2262_v0 }
 0x609   :  { %1947 = vmatpush3.bf16.msra.mxu0 %v2120_v2  ;;  %v2149_v2 = vld [vmem:[#allocation5 + $0x2f0] sm:$0xff]  }
 0x60a   :  { %1948 = vmatprep.subr.bf16.mxu0 %v2262_v0 }
 0x60d   :  { %1949 = vmatpush3.bf16.msra.mxu0 %v2121_v3  ;;  %v2150_v3 = vld [vmem:[#allocation5 + $0x2f8] sm:$0xff]  }
 0x60e   :  { %1950 = vmatprep.subr.bf16.mxu0 %v2262_v0 }
 0x611   :  { %1951 = vmatpush3.bf16.msra.mxu0 %v2122_v14  ;;  %v2151_v14 = vld [vmem:[#allocation5 + $0x300] sm:$0xff]  }
 0x612   :  { %1952 = vmatprep.subr.bf16.mxu0 %v2262_v0 }
 0x615   :  { %1953 = vmatpush3.bf16.msra.mxu0 %v2123_v4  ;;  %v2152_v4 = vld [vmem:[#allocation5 + $0x308] sm:$0xff]  }
 0x616   :  { %1954 = vmatprep.subr.bf16.mxu0 %v2262_v0 }
 0x619   :  { %1955 = vmatpush3.bf16.msra.mxu0 %v2124_v5  ;;  %v2153_v5 = vld [vmem:[#allocation5 + $0x310] sm:$0xff]  }
 0x61a   :  { %1956 = vmatprep.subr.bf16.mxu0 %v2262_v0 }
 0x61d   :  { %1957 = vmatpush3.bf16.msra.mxu0 %v2125_v13 }
 0x61e   :  { %1958 = vmatprep.subr.bf16.mxu0 %v2262_v0 }
 0x621   :  { %1959 = vmatpush3.bf16.msra.mxu0 %v2126_v15 }
 0x622   :  { %1984 = vmatprep.subr.bf16.mxu0 %v2262_v0 }
 0x6d7   :  { %v850_v7 = vpop.f32.mrb[12].mxu0 }
 0x6d8   :  { %v851_v8 = vadd.f32 %v1604_v6, %v850_v7  ;;  %v1922_v9 = vpop.f32.mrb[13].mxu0  ;;  %v2154_v6 = vld [vmem:[#allocation5 + $0x318] sm:$0xff]   ;;  %v2155_v7 = vld [vmem:[#allocation5 + $0x320] sm:$0xff]  }
 0x6d9   :  { %v853_v10 = vpop.f32.mrb[14].mxu0  ;;  %v1640_v9 = vld [vmem:[#allocation7 + $0xa] ss:$0 sm:$0xff] }
 0x6da   :  { %v856_v11 = vpack.c.bf16 %v851_v8, %v851_v8  ;;  %v1923_v12 = vpop.f32.mrb[15].mxu0  ;;  %v2156_v8 = vld [vmem:[#allocation5 + $0x328] sm:$0xff]  }
 0x6dc   :  { %1941 = vmatmul.mubr.bf16.vlgmr.msra.gmra.mrb[12].mxu1 %v856_v11 }
 0x6dd   :  { %1980 = vmatprep.mubr.msk.bf16.mxu1 %vm2263_vm0, %v2262_v0  ;;  %1965 = vmatpush3.bf16.msra.mxu1 %v2127_v16 }
 0x6de   :  { %1966 = vmatprep.subr.bf16.mxu1 %v2262_v0 }
 0x6e1   :  { %1967 = vmatpush3.bf16.msra.mxu1 %v2128_v17 }
 0x6e2   :  { %1968 = vmatprep.subr.bf16.mxu1 %v2262_v0 }
 0x6e5   :  { %1969 = vmatpush3.bf16.msra.mxu1 %v2129_v18 }
 0x6e6   :  { %1970 = vmatprep.subr.bf16.mxu1 %v2262_v0 }
 0x6e9   :  { %1971 = vmatpush3.bf16.msra.mxu1 %v2130_v19  ;;  %v2157_v19 = vld [vmem:[#allocation5 + $0x330] sm:$0xff]  }
 0x6ea   :  { %1972 = vmatprep.subr.bf16.mxu1 %v2262_v0 }
 0x6ed   :  { %1973 = vmatpush3.bf16.msra.mxu1 %v2131_v20  ;;  %v2158_v20 = vld [vmem:[#allocation5 + $0x338] sm:$0xff]  }
 0x6ee   :  { %1974 = vmatprep.subr.bf16.mxu1 %v2262_v0 }
 0x6f1   :  { %1975 = vmatpush3.bf16.msra.mxu1 %v2132_v21  ;;  %v1649_v21 = vld [vmem:[#allocation7 + $0xb] ss:$0 sm:$0xff] }
 0x6f2   :  { %1976 = vmatprep.subr.bf16.mxu1 %v2262_v0 }
 0x6f5   :  { %1977 = vmatpush3.bf16.msra.mxu1 %v2133_v31 }
 0x6f6   :  { %1978 = vmatprep.subr.bf16.mxu1 %v2262_v0 }
 0x6f9   :  { %1979 = vmatpush3.bf16.msra.mxu1 %v2134_v32 }
 0x6fa   :  { %2004 = vmatprep.subr.bf16.mxu1 %v2262_v0 }
 0x7af   :  { %v961_v23 = vpop.f32.mrb[12].mxu1 }
 0x7b0   :  { %v962_v24 = vadd.f32 %v1613_v22, %v961_v23  ;;  %v1942_v25 = vpop.f32.mrb[13].mxu1 }
 0x7b1   :  { %v964_v26 = vpop.f32.mrb[14].mxu1 }
 0x7b2   :  { %v967_v27 = vmul.f32 0.01, %v962_v24  ;;  %v1943_v28 = vpop.f32.mrb[15].mxu1 }
 0x7b4   :  { %v968_v29 = vmax.f32 %v962_v24, %v967_v27 }
 0x7b6   :  { %v969_v30 = vpack.c.bf16 %v968_v29, %v968_v29 }
 0x7b8   :  { %1961 = vmatmul.mubr.bf16.vlgmr.msra.gmra.mrb[16].mxu0 %v969_v30  ;;  %v1658_v30 = vld [vmem:[#allocation7 + $0xc] ss:$0 sm:$0xff] }
 0x7b9   :  { %2000 = vmatprep.mubr.msk.bf16.mxu0 %vm2263_vm0, %v2262_v0  ;;  %1985 = vmatpush3.bf16.msra.mxu0 %v2135_v33 }
 0x7ba   :  { %1986 = vmatprep.subr.bf16.mxu0 %v2262_v0 }
 0x7bd   :  { %1987 = vmatpush3.bf16.msra.mxu0 %v2136_v34 }
 0x7be   :  { %1988 = vmatprep.subr.bf16.mxu0 %v2262_v0 }
 0x7c1   :  { %1989 = vmatpush3.bf16.msra.mxu0 %v2137_v35 }
 0x7c2   :  { %1990 = vmatprep.subr.bf16.mxu0 %v2262_v0 }
 0x7c5   :  { %1991 = vmatpush3.bf16.msra.mxu0 %v2138_v36 }
 0x7c6   :  { %1992 = vmatprep.subr.bf16.mxu0 %v2262_v0 }
 0x7c9   :  { %1993 = vmatpush3.bf16.msra.mxu0 %v2139_v37 }
 0x7ca   :  { %1994 = vmatprep.subr.bf16.mxu0 %v2262_v0 }
 0x7cd   :  { %1995 = vmatpush3.bf16.msra.mxu0 %v2140_v38 }
 0x7ce   :  { %1996 = vmatprep.subr.bf16.mxu0 %v2262_v0 }
 0x7d1   :  { %1997 = vmatpush3.bf16.msra.mxu0 %v2141_v48 }
 0x7d2   :  { %1998 = vmatprep.subr.bf16.mxu0 %v2262_v0 }
 0x7d5   :  { %1999 = vmatpush3.bf16.msra.mxu0 %v2142_v49 }
 0x7d6   :  { %2024 = vmatprep.subr.bf16.mxu0 %v2262_v0 }
 0x88b   :  { %v1074_v40 = vpop.f32.mrb[16].mxu0 }
 0x88c   :  { %v1075_v41 = vadd.f32 %v1622_v39, %v1074_v40  ;;  %v1962_v42 = vpop.f32.mrb[17].mxu0 }
 0x88d   :  { %v1077_v43 = vpop.f32.mrb[18].mxu0 }
 0x88e   :  { %v1080_v44 = vmul.f32 0.01, %v1075_v41  ;;  %v1963_v45 = vpop.f32.mrb[19].mxu0 }
 0x890   :  { %v1081_v46 = vmax.f32 %v1075_v41, %v1080_v44 }
 0x892   :  { %v1082_v47 = vpack.c.bf16 %v1081_v46, %v1081_v46 }
 0x894   :  { %1981 = vmatmul.mubr.bf16.vlgmr.msra.gmra.mrb[16].mxu1 %v1082_v47 }
 0x895   :  { %2020 = vmatprep.mubr.msk.bf16.mxu1 %vm2263_vm0, %v2262_v0  ;;  %2005 = vmatpush3.bf16.msra.mxu1 %v2143_v50 }
 0x896   :  { %2006 = vmatprep.subr.bf16.mxu1 %v2262_v0 }
 0x899   :  { %2007 = vmatpush3.bf16.msra.mxu1 %v2144_v51 }
 0x89a   :  { %2008 = vmatprep.subr.bf16.mxu1 %v2262_v0 }
 0x89d   :  { %2009 = vmatpush3.bf16.msra.mxu1 %v2145_v52 }
 0x89e   :  { %2010 = vmatprep.subr.bf16.mxu1 %v2262_v0 }
 0x8a1   :  { %2011 = vmatpush3.bf16.msra.mxu1 %v2146_v53 }
 0x8a2   :  { %2012 = vmatprep.subr.bf16.mxu1 %v2262_v0 }
 0x8a5   :  { %2013 = vmatpush3.bf16.msra.mxu1 %v2147_v54 }
 0x8a6   :  { %2014 = vmatprep.subr.bf16.mxu1 %v2262_v0 }
 0x8a9   :  { %2015 = vmatpush3.bf16.msra.mxu1 %v2148_v55 }
 0x8aa   :  { %2016 = vmatprep.subr.bf16.mxu1 %v2262_v0 }
 0x8ad   :  { %2017 = vmatpush3.bf16.msra.mxu1 %v2149_v2 }
 0x8ae   :  { %2018 = vmatprep.subr.bf16.mxu1 %v2262_v0 }
 0x8b1   :  { %2019 = vmatpush3.bf16.msra.mxu1 %v2150_v3 }
 0x967   :  { %v1187_v57 = vpop.f32.mrb[16].mxu1 }
 0x968   :  { %v1188_v58 = vadd.f32 %v1631_v56, %v1187_v57  ;;  %v1982_v59 = vpop.f32.mrb[17].mxu1 }
 0x969   :  { %v1190_v60 = vpop.f32.mrb[18].mxu1 }
 0x96a   :  { %v1193_v61 = vmul.f32 0.01, %v1188_v58  ;;  %v1983_v62 = vpop.f32.mrb[19].mxu1 }
 0x96c   :  { %v1194_v63 = vmax.f32 %v1188_v58, %v1193_v61 }
 0x96e   :  { %v1195_v1 = vpack.c.bf16 %v1194_v63, %v1194_v63 }
 0x970   :  { %2001 = vmatmul.mubr.bf16.vlgmr.msra.gmra.mrb[20].mxu0 %v1195_v1 }
 0x971   :  { %2040 = vmatprep.mubr.msk.bf16.mxu0 %vm2263_vm0, %v2262_v0  ;;  %2025 = vmatpush3.bf16.msra.mxu0 %v2151_v14 }
 0x972   :  { %2026 = vmatprep.subr.bf16.mxu0 %v2262_v0 }
 0x975   :  { %2027 = vmatpush3.bf16.msra.mxu0 %v2152_v4 }
 0x976   :  { %2028 = vmatprep.subr.bf16.mxu0 %v2262_v0 }
 0x979   :  { %2029 = vmatpush3.bf16.msra.mxu0 %v2153_v5 }
 0x97a   :  { %2030 = vmatprep.subr.bf16.mxu0 %v2262_v0 }
 0x97d   :  { %2031 = vmatpush3.bf16.msra.mxu0 %v2154_v6 }
 0x97e   :  { %2032 = vmatprep.subr.bf16.mxu0 %v2262_v0 }
 0x981   :  { %2033 = vmatpush3.bf16.msra.mxu0 %v2155_v7 }
 0x982   :  { %2034 = vmatprep.subr.bf16.mxu0 %v2262_v0 }
 0x985   :  { %2035 = vmatpush3.bf16.msra.mxu0 %v2156_v8 }
 0x986   :  { %2036 = vmatprep.subr.bf16.mxu0 %v2262_v0 }
 0x989   :  { %2037 = vmatpush3.bf16.msra.mxu0 %v2157_v19 }
 0x98a   :  { %2038 = vmatprep.subr.bf16.mxu0 %v2262_v0 }
 0x98d   :  { %2039 = vmatpush3.bf16.msra.mxu0 %v2158_v20 }
 0xa43   :  { %v1300_v10 = vpop.f32.mrb[20].mxu0 }
 0xa44   :  { %v1301_v11 = vadd.f32 %v1640_v9, %v1300_v10  ;;  %v2002_v12 = vpop.f32.mrb[21].mxu0 }
 0xa45   :  { %v1303_v13 = vpop.f32.mrb[22].mxu0 }
 0xa46   :  { %v1306_v15 = vmul.f32 0.01, %v1301_v11  ;;  %v2003_v16 = vpop.f32.mrb[23].mxu0 }
 0xa48   :  { %v1307_v17 = vmax.f32 %v1301_v11, %v1306_v15 }
 0xa4a   :  { %v1308_v18 = vpack.c.bf16 %v1307_v17, %v1307_v17 }
 0xa4c   :  { %2021 = vmatmul.mubr.bf16.vlgmr.msra.gmra.mrb[20].mxu1 %v1308_v18 }
 0xb1f   :  { %v1413_v22 = vpop.f32.mrb[20].mxu1 }
 0xb20   :  { %v1414_v23 = vadd.f32 %v1649_v21, %v1413_v22  ;;  %v2022_v24 = vpop.f32.mrb[21].mxu1 }
 0xb21   :  { %v1416_v25 = vpop.f32.mrb[22].mxu1 }
 0xb22   :  { %v1419_v26 = vmul.f32 0.01, %v1414_v23  ;;  %v2023_v27 = vpop.f32.mrb[23].mxu1 }
 0xb24   :  { %v1420_v28 = vmax.f32 %v1414_v23, %v1419_v26 }
 0xb26   :  { %v1421_v29 = vpack.c.bf16 %v1420_v28, %v1420_v28 }
 0xb28   :  { %2041 = vmatmul.mubr.bf16.vlgmr.msra.gmra.mrb[24].mxu0 %v1421_v29 }
 0xbfb   :  { %v1526_v31 = vpop.f32.mrb[24].mxu0 }
 0xbfc   :  { %v1527_v32 = vadd.f32 %v1658_v30, %v1526_v31  ;;  %v2042_v33 = vpop.f32.mrb[25].mxu0 }
 0xbfd   :  { %v1529_v0 = vpop.f32.mrb[26].mxu0 }
 0xbfe   :  { %v2043_v34 = vpop.f32.mrb[27].mxu0  ;;  %1533 = vst.msk [vmem:[#allocation8] sm:$0xff] %vm1532_vm3, %v1527_v32 }
 0xbff   :  { %2238 = shalt.err (!%p2235_p0)
}
 0xc00   :  { %s2239_s28 = scalar_lea.hbm %s2472_s3, 128 }
 0xc01   :  { %p2240_p1 = scmp.ne.s32.totalorder %s2472_s3, %s2239_s28  ;;  %p2243_p2 = scmp.lt.u32.totalorder %s2239_s28, %s2472_s3 }
 0xc03   :  { %p2245_p3 = pnand %p2243_p2, %p2240_p1 }
 0xc05   :  { %2248 = shalt.err (!%p2245_p3)
}
 0xc06   :  { %1543 = dma.vmem_to_hbm [thread:$0]  %s1541_s24, 128, %s2472_s3, [#allocation4]  }
 0xc07   :  { %2253 = dma.done.wait [#allocation4], 128  }
 0xc08   :  { %2254 = vsyncadd [#allocation4], 4294967168 }
 0xc09   :  { %1547 = vsyncpa [#allocation3], 1 }
 0xc0a   :  { %1548 = vsyncpa [#allocation6], 1 }
 0xc0b   :  { %1549 = vsyncpa [#allocation4], 1 }

</bundles_post_ra>
